<compile_context>
chip_gen: v7x
topology: tpu7x:2x2x1
jax: 0.10.0
libtpu: 0.0.40
codegen_flags: <defaults>
</compile_context>

<pallas_src>
import jax
import jax.numpy as jnp
from jax import lax
from jax.experimental import pallas as pl
from jax.experimental.pallas import tpu as pltpu

TILE = 128  # spatial tile size on the 128-lane axis (used for both output dims)


def _round_up(x, m):
    return (x + m - 1) // m * m


def _corr_kernel(a_ref, b_ref, o_ref):
    """o[j, i] = sum_c a[c, j] * b[c, i]  (single lhs-transposed MXU matmul)."""
    o_ref[...] = lax.dot_general(
        a_ref[...], b_ref[...],
        dimension_numbers=(((0,), (0,)), ((), ())),   # contract channel dim of both
        preferred_element_type=jnp.float32,
    ).astype(o_ref.dtype)


def feature_correlation(feature_A, feature_B):
    """Pallas TPU implementation of FeatureCorrelation.forward.

    feature_A, feature_B: [b, c, h, w]  ->  correlation tensor [b, h*w, h, w]
    """
    b, c, h, w = feature_A.shape
    assert feature_B.shape == (b, c, h, w)
    hw = h * w

    A = feature_A.reshape(b, c, hw)   # contiguous views: no data movement
    B = feature_B.reshape(b, c, hw)

    # Channels stay whole as the (small) contraction dim -> one K step.
    # Pad only when hardware layout demands it; the demo shapes below take the
    # pad-free path (c multiple of 8, hw multiple of 128).
    c_p = _round_up(c, 8)
    hw_p = _round_up(hw, TILE)
    if (c_p, hw_p) != (c, hw):
        pad = ((0, 0), (0, c_p - c), (0, hw_p - hw))
        A = jnp.pad(A, pad)
        B = jnp.pad(B, pad)

    grid = (b, hw_p // TILE, hw_p // TILE)

    out = pl.pallas_call(
        _corr_kernel,
        out_shape=jax.ShapeDtypeStruct((b, hw_p, hw_p), feature_A.dtype),
        grid=grid,
        in_specs=[
            # feature_A tile: [c, TILE_j]; invariant along the innermost i axis,
            # so Pallas keeps it resident instead of re-DMAing it every step.
            pl.BlockSpec((None, c_p, TILE), lambda n, j, i: (n, 0, j)),
            # feature_B tile: [c, TILE_i]
            pl.BlockSpec((None, c_p, TILE), lambda n, j, i: (n, 0, i)),
        ],
        out_specs=pl.BlockSpec((None, TILE, TILE), lambda n, j, i: (n, j, i)),
        compiler_params=pltpu.CompilerParams(
            dimension_semantics=("parallel", "parallel", "parallel")),
    )(A, B)

    if hw_p != hw:
        out = out[:, :hw, :hw]

    # out[b, j, i] already equals feature_mul.transpose(1, 2); unflatten i -> (h, w).
    return out.reshape(b, hw, h, w)


def _reference(feature_A, feature_B):
    """Pure-JAX mirror of the PyTorch module (for verification)."""
    b, c, h, w = feature_A.shape
    A = feature_A.reshape(b, c, h * w)
    Bt = jnp.transpose(feature_B.reshape(b, c, h * w), (0, 2, 1))
    mul = jnp.einsum("bic,bcj->bij", Bt, A, precision=lax.Precision.HIGHEST)
    return jnp.transpose(mul, (0, 2, 1)).reshape(b, h * w, h, w)


if __name__ == "__main__":
    key = jax.random.PRNGKey(0)
    ka, kb = jax.random.split(key)
    b, c, h, w = 2, 32, 16, 16
    feature_A = jax.random.normal(ka, (b, c, h, w), jnp.float32)
    feature_B = jax.random.normal(kb, (b, c, h, w), jnp.float32)

    corr = jax.jit(feature_correlation)(feature_A, feature_B)
    corr = jax.block_until_ready(corr)

    assert corr.shape == (b, h * w, h, w), corr.shape
    assert bool(jnp.all(jnp.isfinite(corr)))

    ref = _reference(feature_A, feature_B)
    max_err = float(jnp.max(jnp.abs(corr - ref)))
    scale = float(jnp.max(jnp.abs(ref))) + 1e-6
    assert max_err / scale < 2e-2, (max_err, scale)

    print("KERNEL_OK")
</pallas_src>

<mosaic_0001>
module attributes {stable_mosaic.version = 11 : i64} {
  func.func @_corr_kernel(%arg0: i32, %arg1: i32, %arg2: i32, %arg3: memref<1x32x128xf32, #tpu.memory_space<vmem>>, %arg4: memref<1x32x128xf32, #tpu.memory_space<vmem>>, %arg5: memref<1x128x128xf32, #tpu.memory_space<vmem>>) attributes {dimension_semantics = [#tpu.dimension_semantics<parallel>, #tpu.dimension_semantics<parallel>, #tpu.dimension_semantics<parallel>], iteration_bounds = array<i64: 2, 2, 2>, scalar_prefetch = 0 : i64, scratch_operands = 0 : i64, tpu.core_type = #tpu.core_type<tc>, window_params = [{transform_indices = @transform_0, window_bounds = array<i64: 1, 32, 128>}, {transform_indices = @transform_1, window_bounds = array<i64: 1, 32, 128>}, {transform_indices = @transform_2, window_bounds = array<i64: 1, 128, 128>}]} {
    %c0 = arith.constant 0 : index
    %c0_0 = arith.constant 0 : index
    %c0_1 = arith.constant 0 : index
    %0 = vector.load %arg3[%c0, %c0_0, %c0_1] : memref<1x32x128xf32, #tpu.memory_space<vmem>>, vector<1x32x128xf32>
    %1 = vector.shape_cast %0 : vector<1x32x128xf32> to vector<32x128xf32>
    %c0_2 = arith.constant 0 : index
    %c0_3 = arith.constant 0 : index
    %c0_4 = arith.constant 0 : index
    %2 = vector.load %arg4[%c0_2, %c0_3, %c0_4] : memref<1x32x128xf32, #tpu.memory_space<vmem>>, vector<1x32x128xf32>
    %3 = vector.shape_cast %2 : vector<1x32x128xf32> to vector<32x128xf32>
    %cst = arith.constant dense<0.000000e+00> : vector<128x128xf32>
    %4 = tpu.matmul %1, %3, %cst {dimension_numbers = #tpu.dot_dimension_numbers<[0], [0], [1], [1], [0, 1, 1, 1], [], []>} : vector<32x128xf32>, vector<32x128xf32>, vector<128x128xf32> -> vector<128x128xf32>
    %c0_5 = arith.constant 0 : index
    %c0_6 = arith.constant 0 : index
    %c0_7 = arith.constant 0 : index
    %5 = vector.load %arg5[%c0_5, %c0_6, %c0_7] : memref<1x128x128xf32, #tpu.memory_space<vmem>>, vector<1x128x128xf32>
    %6 = vector.shape_cast %5 : vector<1x128x128xf32> to vector<128x128xf32>
    %7 = vector.shape_cast %4 : vector<128x128xf32> to vector<1x128x128xf32>
    tpu.vector_store %arg5[%c0_5, %c0_6, %c0_7], %7 {strides = array<i32>} : memref<1x128x128xf32, #tpu.memory_space<vmem>>, vector<1x128x128xf32>,
    return
  }
  func.func @transform_0(%arg0: i32, %arg1: i32, %arg2: i32) -> (i32, i32, i32) {
    %c0_i32 = arith.constant 0 : i32
    %c0_i32_0 = arith.constant 0 : i32
    return %arg0, %c0_i32, %arg1 : i32, i32, i32
  }
  func.func @transform_1(%arg0: i32, %arg1: i32, %arg2: i32) -> (i32, i32, i32) {
    %c0_i32 = arith.constant 0 : i32
    %c0_i32_0 = arith.constant 0 : i32
    return %arg0, %c0_i32, %arg2 : i32, i32, i32
  }
  func.func @transform_2(%arg0: i32, %arg1: i32, %arg2: i32) -> (i32, i32, i32) {
    %c0_i32 = arith.constant 0 : i32
    return %arg0, %arg1, %arg2 : i32, i32, i32
  }
}

</mosaic_0001>

<bundles_post_ra>
// kernel: feature_correlation.1
= control target key start
LH: loop header
LB: loop body
LE: loop exit
PB: predicated region body
PF: predicated region fallthrough
CT: control target
= control target key end

     0   :  { %s1303_s0 = inlined_call_operand.vmem [shape: f32[2,32,256], index: 0, kind: input, shape index: {}]   ;;  %s1304_s1 = inlined_call_operand.vmem [shape: f32[2,32,256], index: 1, kind: input, shape index: {}]   ;;  %s1305_s2 = inlined_call_operand.vmem [shape: f32[2,256,256], index: 2, kind: output, shape index: {}]  }
   0x1   :  { %1308 = sst [smem:[#allocation8_spill]] %s1305_s2 }
   0x2   :  { %s1064_s9 = smov 0   ;;  %s1066_s10 = smov 0  }
   0x3   :  { %s1068_s11 = smov 0   ;;  %s1070_s12 = smov 0  }
   0x4   :  { %s1072_s13 = smov 0   ;;  %s1074_s14 = smov 0  }
   0x5   :  { %s1076_s15 = smov 0   ;;  %s1078_s16 = smov 0  }
   0x6   :  { %s1080_s17 = smov 0   ;;  %s1082_s18 = smov 0  }
   0x7   :  { %s1084_s19 = smov 0   ;;  %s1086_s20 = smov 0  }
   0x8   :  { %s1088_s21 = smov 0  }
   0x9 LB: > { %1309 = sst [smem:[#allocation5_spill]] %s1023_s15  ;;  %s24_s22 = sadd.s32 1, %s1035_s18  ;;  %s1047_s21 = sphi %s1088_s21, %s12_s21   ;;  %s1043_s20 = sphi %s1086_s20, %s1331_s20   ;;  %s1039_s19 = sphi %s1084_s19, %s1330_s19   ;;  %s1035_s18 = sphi %s1082_s18, %s1329_s18   ;;  %s1031_s17 = sphi %s1080_s17, %s1328_s17   ;;  %s1027_s16 = sphi %s1078_s16, %s1327_s16   ;;  %s1023_s15 = sphi %s1076_s15, %s1326_s15   ;;  %s1019_s14 = sphi %s1074_s14, %s1325_s14   ;;  %s1015_s13 = sphi %s1072_s13, %s1324_s13   ;;  %s1011_s12 = sphi %s1070_s12, %s1323_s12   ;;  %s1007_s11 = sphi %s1068_s11, %s1322_s11   ;;  %s1003_s10 = sphi %s1066_s10, %s1321_s10   ;;  %s999_s9 = sphi %s1064_s9, %s1320_s9  }
   0xa   : > { %p25_p0 = scmp.ge.s32.totalorder %s24_s22, 2  ;;  %s27_s23 = sadd.s32 1, %s1039_s19 }
   0xb   : > { %s738_s24 = sadd.s32 4294967295, %s1047_s21   ;;  %p47_p1 = scmp.ne.s32.totalorder %s1019_s14, %s1015_s13 }
   0xc   : > { %s1333_s22 = smov (%p25_p0, %s24_s22), 0  ;;  %s1335_s23 = smov (!%p25_p0, %s27_s23), %s1039_s19 }
   0xd   : > { %1310 = sst [smem:[#allocation6_spill]] %s1333_s22  ;;  %p48_p2 = scmp.eq.s32.totalorder %s1047_s21, 0 }
   0xe   : > { %p29_p3 = scmp.ge.s32.totalorder %s1335_s23, 2  ;;  %s31_s25 = sadd.s32 1, %s1043_s20 }
   0xf   : > { %s40_s26 = sadd.s32 1, %s1019_s14  ;;  %p1140_p4 = por %p48_p2, %p47_p1 }
  0x10   : > { %s1337_s23 = smov (%p29_p3, %s1335_s23), 0  ;;  %s1339_s25 = smov (!%p29_p3, %s31_s25), %s1043_s20 }
  0x11   : > { %1312 = sst [smem:[#allocation7_spill]] %s1337_s23  ;;  %s64_s28 = ssub.s32 %s1035_s18, %s1333_s22 }
  0x12   : > { %p75_p5 = scmp.ne.s32.totalorder %s1011_s12, %s1007_s11  ;;  %p33_p6 = scmp.ge.s32.totalorder %s1339_s25, 2 }
  0x13   : > { %s68_s29 = sadd.s32 1, %s1011_s12  ;;  %s36_s30 = ssub.s32 %s1039_s19, %s1337_s23 }
  0x14   : > { %p1154_p7 = por %p75_p5, %p48_p2  ;;  %s1341_s25 = smov (%p33_p6, %s1339_s25), 0 }
  0x15   : > { %p108_p8 = scmp.ne.s32.totalorder %s1003_s10, %s999_s9  ;;  %p109_p9 = scmp.eq.s32.totalorder %s738_s24, 7 }
  0x16   : > { %s35_s4 = ssub.s32 %s1043_s20, %s1341_s25  ;;  %s98_s5 = sadd.s32 1, %s1003_s10 }
  0x17   : > { %s37_s6 = sor.u32 %s36_s30, %s35_s4  ;;  %s65_s7 = sor.u32 %s64_s28, %s35_s4 }
  0x18   : > { %p38_p10 = scmp.eq.s32.totalorder %s37_s6, 0  ;;  %p66_p11 = scmp.eq.s32.totalorder %s65_s7, 0 }
  0x19   : > { %s95_s8 = sor.u32 %s64_s28, %s37_s6  ;;  %p1165_p12 = por %p109_p9, %p108_p8 }
  0x1a   : > { %s1170_s23 = scalar_select %p38_p10, %s1019_s14, %s40_s26  }
  0x1b   : > { %s1173_s2 = scalar_select %p66_p11, %s1011_s12, %s68_s29  }
  0x1c   : > { %p96_p13 = scmp.eq.s32.totalorder %s95_s8, 0  ;;  %p741_p0 = scmp.ge.s32.totalorder %s1047_s21, 8 }
  0x1e   : > { %s1176_s15 = scalar_select %p96_p13, %s1003_s10, %s98_s5  }
  0x1f   : > { %131 = sbr.rel (%p741_p0) target bundleno = 54 (0x36), region = 16 }
  0x26   : > { %134 = sbr.rel (!%p1140_p4) target bundleno = 46 (0x2e), region = 20  ;;  %s136_s24 = sand.u32 (%p1140_p4), 1, %s1019_s14  }
  0x27   : > { %s743_s28 = sshll.u32 (%p1140_p4), %s1043_s20, 3  ;;  %s742_s30 = sshll.u32 (%p1140_p4), %s136_s24, 5 }
  0x28   : > { %s140_s4 = sadd.s32 (%p1140_p4), %s1039_s19, %s743_s28  ;;  %s138_s5 = scalar_lea.vmem (%p1140_p4), [#allocation2], %s742_s30 }
  0x29   : > { %s744_s26 = sshll.u32 (%p1140_p4), %s140_s4, 3 }
  0x2a   : > { %s142_s7 = scalar_lea.vmem (%p1140_p4), %s1303_s0, %s744_s26 }
  0x2b   : > { %v176_v0 = vld [vmem:[%s142_s7] sm:$0xff] (%p1140_p4)  ;;  %v178_v1 = vld [vmem:[%s142_s7 + $0x10] sm:$0xff] (%p1140_p4) }
  0x2c   : > { %v180_v2 = vld [vmem:[%s142_s7 + $0x20] sm:$0xff] (%p1140_p4)  ;;  %177 = vst [vmem:[%s138_s5] sm:$0xff] (%p1140_p4), %v176_v0  ;;  %179 = vst [vmem:[%s138_s5 + $0x8] sm:$0xff] (%p1140_p4), %v178_v1  ;;  %v182_v3 = vld [vmem:[%s142_s7 + $0x30] sm:$0xff] (%p1140_p4) }
  0x2d   : > { %181 = vst [vmem:[%s138_s5 + $0x10] sm:$0xff] %v180_v2  ;;  %183 = vst [vmem:[%s138_s5 + $0x18] sm:$0xff] %v182_v3 }
  0x2e PF: > { %189 = sbr.rel (!%p1154_p7) target bundleno = 54 (0x36), region = 58  ;;  %s191_s27 = sand.u32 (%p1154_p7), 1, %s1011_s12  }
  0x2f   : > { %s746_s8 = sshll.u32 (%p1154_p7), %s1043_s20, 3  ;;  %s745_s24 = sshll.u32 (%p1154_p7), %s191_s27, 5 }
  0x30   : > { %s195_s28 = sadd.s32 (%p1154_p7), %s1035_s18, %s746_s8  ;;  %s193_s29 = scalar_lea.vmem (%p1154_p7), [#allocation3], %s745_s24 }
  0x31   : > { %s747_s4 = sshll.u32 (%p1154_p7), %s195_s28, 3 }
  0x32   : > { %s197_s30 = scalar_lea.vmem (%p1154_p7), %s1304_s1, %s747_s4 }
  0x33   : > { %v231_v4 = vld [vmem:[%s197_s30] sm:$0xff] (%p1154_p7)  ;;  %v233_v5 = vld [vmem:[%s197_s30 + $0x10] sm:$0xff] (%p1154_p7) }
  0x34   : > { %v235_v6 = vld [vmem:[%s197_s30 + $0x20] sm:$0xff] (%p1154_p7)  ;;  %232 = vst [vmem:[%s193_s29] sm:$0xff] (%p1154_p7), %v231_v4  ;;  %234 = vst [vmem:[%s193_s29 + $0x8] sm:$0xff] (%p1154_p7), %v233_v5  ;;  %v237_v7 = vld [vmem:[%s197_s30 + $0x30] sm:$0xff] (%p1154_p7) }
  0x35   : > { %236 = vst [vmem:[%s193_s29 + $0x10] sm:$0xff] %v235_v6  ;;  %238 = vst [vmem:[%s193_s29 + $0x18] sm:$0xff] %v237_v7 }
  0x36 PF: > { %p748_p1 = scmp.ge.s32.totalorder %s1047_s21, 1  ;;  %p243_p2 = scmp.lt.s32.totalorder %s1047_s21, 9 }
  0x38   : > { %p244_p3 = pnand %p748_p1, %p243_p2 }
  0x39   : > { %s250_s3 = sand.u32 (!%p244_p3), 1, %s1015_s13   ;;  %s257_s7 = sand.u32 (!%p244_p3), 1, %s1007_s11   ;;  %vm322_vm0 = vcmask (!%p244_p3), 261120  }
  0x3a   : > { %247 = sbr.rel (%p244_p3) target bundleno = 472 (0x1d8), region = 96  ;;  %s749_s5 = sshll.u32 (!%p244_p3), %s250_s3, 5 }
  0x3b   : > { %s750_s27 = sshll.u32 (!%p244_p3), %s257_s7, 5  ;;  %s252_s8 = scalar_lea.vmem (!%p244_p3), [#allocation2], %s749_s5 }
  0x3c   : > { %v282_v8 = vld [vmem:[%s252_s8] sm:$0xff] (!%p244_p3)  ;;  %s259_s24 = scalar_lea.vmem (!%p244_p3), [#allocation3], %s750_s27  ;;  %v283_v11 = vld [vmem:[%s252_s8 + $0x8] sm:$0xff] (!%p244_p3)  ;;  %v284_v16 = vld [vmem:[%s252_s8 + $0x10] sm:$0xff] (!%p244_p3)  ;;  %s278_s11 = sand.u32 (!%p244_p3), 1, %s999_s9  }
  0x3d   : > { %290 = vxpose.xlu0.b32.start [1/4] (short) (!%p244_p3), %v282_v8, 128  ;;  %v286_v9 = vld [vmem:[%s259_s24] sm:$0xff] (!%p244_p3)  ;;  %v287_v10 = vld [vmem:[%s259_s24 + $0x8] sm:$0xff] (!%p244_p3)  ;;  %v288_v13 = vld [vmem:[%s259_s24 + $0x10] sm:$0xff] (!%p244_p3)  ;;  %s751_s13 = sshll.u32 (!%p244_p3), %s278_s11, 7 }
  0x3e   : > { %v828_v12 = vpack.c.bf16 (!%p244_p3), %v287_v10, %v286_v9  ;;  %v289_v14 = vld [vmem:[%s259_s24 + $0x18] sm:$0xff] (!%p244_p3)  ;;  %s1216_s28 = scalar_lea.vmem (!%p244_p3), [#allocation4], %s751_s13 }
  0x3f   : > { %v832_v15 = vpack.c.bf16 (!%p244_p3), %v289_v14, %v288_v13  ;;  %v285_v17 = vld [vmem:[%s252_s8 + $0x18] sm:$0xff] (!%p244_p3) }
  0x40   : > { %829 = vmatprep.subr.bf16.mxu0 (!%p244_p3), %v828_v12  ;;  %836 = vmatprep.subr.bf16.mxu1 (!%p244_p3), %v828_v12 }
  0x41   : > { %291 = vxpose.xlu0.b32.cont [2/4] (short) %v283_v11, 128  ;;  %831 = vmatpush3.bf16.msra.mxu0 %v828_v12  ;;  %s1315_s9 = sld [smem:[#allocation5_spill]] (%p1165_p12)  ;;  %s775_s4 = sshll.u32 (%p1165_p12), %s1027_s16, 5 }
  0x42   : > { %833 = vmatprep.subr.bf16.mxu0 %v832_v15  ;;  %838 = vmatpush3.bf16.msra.mxu1 %v828_v12  ;;  %s771_s26 = sshll.u32 (%p1165_p12), %s1031_s17, 6  ;;  %s1316_s29 = sld [smem:[#allocation8_spill]] (%p1165_p12) }
  0x43   : > { %837 = vmatprep.subr.bf16.mxu1 %v832_v15 }
  0x45   : > { %292 = vxpose.xlu0.b32.cont [3/4] (short) %v284_v16, 128  ;;  %835 = vmatpush3.bf16.msra.mxu0 %v832_v15 }
  0x46   : > { %839 = vmatpush3.bf16.msra.mxu1 %v832_v15 }
  0x47   : > { %s541_s22 = sadd.s32 (%p1165_p12), %s1315_s9, %s775_s4 }
  0x48   : > { %s543_s6 = sadd.s32 (%p1165_p12), %s771_s26, %s541_s22 }
  0x49   : > { %293 = vxpose.xlu0.b32.end [4/4] (short) %v285_v17, 128  ;;  %s772_s30 = sshll.u32 (%p1165_p12), %s543_s6, 3 }
  0x4a   : > { %s545_s3 = scalar_lea.vmem (%p1165_p12), %s1316_s29, %s772_s30 }
  0xbd   : > { %v306_v18 = vpop.trf.xlu0 }
  0xbe   : > { %804 = vmatprep.mubr.msk.f32.mxu0 %vm322_vm0, %v306_v18 }
  0xc1   : > { %v307_v19 = vpop.trf.xlu0 }
  0xc2   : > { %805 = vmatmul.mubr.msk.f32.vlgmr.msra.gmra.mrb[0].mxu0 %vm322_vm0, %v307_v19 }
  0xc5   : > { %v308_v20 = vpop.trf.xlu0 }
  0xc6   : > { %807 = vmatprep.mubr.msk.f32.mxu0 %vm322_vm0, %v308_v20 }
  0xc9   : > { %v309_v21 = vpop.trf.xlu0 }
  0xca   : > { %808 = vmatmul.mubr.msk.f32.gmra.mrb[2].mxu0 %vm322_vm0, %v309_v21 }
  0xcd   : > { %v310_v22 = vpop.trf.xlu0 }
  0xce   : > { %810 = vmatprep.mubr.msk.f32.mxu0 %vm322_vm0, %v310_v22 }
  0xd1   : > { %v311_v23 = vpop.trf.xlu0 }
  0xd2   : > { %811 = vmatmul.mubr.msk.f32.gmra.mrb[4].mxu0 %vm322_vm0, %v311_v23 }
  0xd5   : > { %v312_v24 = vpop.trf.xlu0 }
  0xd6   : > { %813 = vmatprep.mubr.msk.f32.mxu0 %vm322_vm0, %v312_v24 }
  0xd9   : > { %v313_v25 = vpop.trf.xlu0 }
  0xda   : > { %814 = vmatmul.mubr.msk.f32.gmra.mrb[6].mxu0 %vm322_vm0, %v313_v25 }
  0xdd   : > { %v314_v26 = vpop.trf.xlu0 }
  0xde   : > { %816 = vmatprep.mubr.msk.f32.mxu1 %vm322_vm0, %v314_v26 }
  0xe1   : > { %v315_v27 = vpop.trf.xlu0 }
  0xe2   : > { %817 = vmatmul.mubr.msk.f32.vlgmr.msra.gmra.mrb[0].mxu1 %vm322_vm0, %v315_v27 }
  0xe5   : > { %v316_v28 = vpop.trf.xlu0 }
  0xe6   : > { %819 = vmatprep.mubr.msk.f32.mxu1 %vm322_vm0, %v316_v28 }
  0xe9   : > { %v317_v29 = vpop.trf.xlu0 }
  0xea   : > { %820 = vmatmul.mubr.msk.f32.gmra.mrb[2].mxu1 %vm322_vm0, %v317_v29 }
  0xed   : > { %v318_v30 = vpop.trf.xlu0 }
  0xee   : > { %822 = vmatprep.mubr.msk.f32.mxu1 %vm322_vm0, %v318_v30 }
  0xf1   : > { %v319_v31 = vpop.trf.xlu0 }
  0xf2   : > { %823 = vmatmul.mubr.msk.f32.gmra.mrb[4].mxu1 %vm322_vm0, %v319_v31 }
  0xf5   : > { %v320_v32 = vpop.trf.xlu0 }
  0xf6   : > { %825 = vmatprep.mubr.msk.f32.mxu1 %vm322_vm0, %v320_v32 }
  0xf9   : > { %v321_v33 = vpop.trf.xlu0 }
  0xfa   : > { %826 = vmatmul.mubr.msk.f32.gmra.mrb[6].mxu1 %vm322_vm0, %v321_v33 }
 0x195   : > { %v806_v34 = vpop.f32.mrb[0].mxu0 }
 0x196   : > { %517 = vst [vmem:[%s1216_s28 + $0x8] sm:$0xff] %v806_v34  ;;  %v437_v35 = vpop.f32.mrb[1].mxu0 }
 0x197   : > { %516 = vst [vmem:[%s1216_s28] sm:$0xff] %v437_v35 }
 0x19d   : > { %v809_v36 = vpop.f32.mrb[2].mxu0  ;;  %v605_v51 = vld [vmem:[%s1216_s28 + $0x8] sm:$0xff] (%p1165_p12) }
 0x19e   : > { %519 = vst [vmem:[%s1216_s28 + $0x18] sm:$0xff] %v809_v36  ;;  %v447_v37 = vpop.f32.mrb[3].mxu0  ;;  %v603_v50 = vld [vmem:[%s1216_s28] sm:$0xff] (%p1165_p12)  ;;  %606 = vst [vmem:[%s545_s3 + $0x10] sm:$0xff] (%p1165_p12), %v605_v51 }
 0x19f   : > { %518 = vst [vmem:[%s1216_s28 + $0x10] sm:$0xff] %v447_v37  ;;  %604 = vst [vmem:[%s545_s3] sm:$0xff] (%p1165_p12), %v603_v50 }
 0x1a5   : > { %v812_v38 = vpop.f32.mrb[4].mxu0  ;;  %v609_v53 = vld [vmem:[%s1216_s28 + $0x18] sm:$0xff] (%p1165_p12) }
 0x1a6   : > { %521 = vst [vmem:[%s1216_s28 + $0x28] sm:$0xff] %v812_v38  ;;  %v457_v39 = vpop.f32.mrb[5].mxu0  ;;  %v607_v52 = vld [vmem:[%s1216_s28 + $0x10] sm:$0xff] (%p1165_p12)  ;;  %610 = vst [vmem:[%s545_s3 + $0x30] sm:$0xff] (%p1165_p12), %v609_v53 }
 0x1a7   : > { %520 = vst [vmem:[%s1216_s28 + $0x20] sm:$0xff] %v457_v39  ;;  %608 = vst [vmem:[%s545_s3 + $0x20] sm:$0xff] (%p1165_p12), %v607_v52 }
 0x1ad   : > { %v815_v40 = vpop.f32.mrb[6].mxu0  ;;  %v613_v55 = vld [vmem:[%s1216_s28 + $0x28] sm:$0xff] (%p1165_p12) }
 0x1ae   : > { %523 = vst [vmem:[%s1216_s28 + $0x38] sm:$0xff] %v815_v40  ;;  %v467_v41 = vpop.f32.mrb[7].mxu0  ;;  %v611_v54 = vld [vmem:[%s1216_s28 + $0x20] sm:$0xff] (%p1165_p12)  ;;  %614 = vst [vmem:[%s545_s3 + $0x50] sm:$0xff] (%p1165_p12), %v613_v55 }
 0x1af   : > { %522 = vst [vmem:[%s1216_s28 + $0x30] sm:$0xff] %v467_v41  ;;  %612 = vst [vmem:[%s545_s3 + $0x40] sm:$0xff] (%p1165_p12), %v611_v54 }
 0x1b5   : > { %v818_v42 = vpop.f32.mrb[0].mxu1  ;;  %v617_v57 = vld [vmem:[%s1216_s28 + $0x38] sm:$0xff] (%p1165_p12) }
 0x1b6   : > { %525 = vst [vmem:[%s1216_s28 + $0x48] sm:$0xff] %v818_v42  ;;  %v477_v43 = vpop.f32.mrb[1].mxu1  ;;  %v615_v56 = vld [vmem:[%s1216_s28 + $0x30] sm:$0xff] (%p1165_p12)  ;;  %618 = vst [vmem:[%s545_s3 + $0x70] sm:$0xff] (%p1165_p12), %v617_v57 }
 0x1b7   : > { %524 = vst [vmem:[%s1216_s28 + $0x40] sm:$0xff] %v477_v43  ;;  %616 = vst [vmem:[%s545_s3 + $0x60] sm:$0xff] (%p1165_p12), %v615_v56 }
 0x1bd   : > { %v821_v44 = vpop.f32.mrb[2].mxu1  ;;  %v621_v59 = vld [vmem:[%s1216_s28 + $0x48] sm:$0xff] (%p1165_p12) }
 0x1be   : > { %527 = vst [vmem:[%s1216_s28 + $0x58] sm:$0xff] %v821_v44  ;;  %v487_v45 = vpop.f32.mrb[3].mxu1  ;;  %v619_v58 = vld [vmem:[%s1216_s28 + $0x40] sm:$0xff] (%p1165_p12)  ;;  %622 = vst [vmem:[%s545_s3 + $0x90] sm:$0xff] (%p1165_p12), %v621_v59 }
 0x1bf   : > { %526 = vst [vmem:[%s1216_s28 + $0x50] sm:$0xff] %v487_v45  ;;  %620 = vst [vmem:[%s545_s3 + $0x80] sm:$0xff] (%p1165_p12), %v619_v58 }
 0x1c5   : > { %v824_v46 = vpop.f32.mrb[4].mxu1  ;;  %v625_v61 = vld [vmem:[%s1216_s28 + $0x58] sm:$0xff] (%p1165_p12) }
 0x1c6   : > { %529 = vst [vmem:[%s1216_s28 + $0x68] sm:$0xff] %v824_v46  ;;  %v497_v47 = vpop.f32.mrb[5].mxu1  ;;  %v623_v60 = vld [vmem:[%s1216_s28 + $0x50] sm:$0xff] (%p1165_p12)  ;;  %626 = vst [vmem:[%s545_s3 + $0xb0] sm:$0xff] (%p1165_p12), %v625_v61 }
 0x1c7   : > { %528 = vst [vmem:[%s1216_s28 + $0x60] sm:$0xff] %v497_v47  ;;  %624 = vst [vmem:[%s545_s3 + $0xa0] sm:$0xff] (%p1165_p12), %v623_v60 }
 0x1c9   : > { %538 = sbr.rel (!%p1165_p12) target bundleno = 472 (0x1d8), region = 108 }
 0x1cd   : > { %v827_v48 = vpop.f32.mrb[6].mxu1  ;;  %v629_v63 = vld [vmem:[%s1216_s28 + $0x68] sm:$0xff] (%p1165_p12) }
 0x1ce   : > { %531 = vst [vmem:[%s1216_s28 + $0x78] sm:$0xff] %v827_v48  ;;  %v507_v49 = vpop.f32.mrb[7].mxu1  ;;  %v627_v62 = vld [vmem:[%s1216_s28 + $0x60] sm:$0xff] (%p1165_p12)  ;;  %630 = vst [vmem:[%s545_s3 + $0xd0] sm:$0xff] (%p1165_p12), %v629_v63 }
 0x1cf   : > { %530 = vst [vmem:[%s1216_s28 + $0x70] sm:$0xff] %v507_v49  ;;  %628 = vst [vmem:[%s545_s3 + $0xc0] sm:$0xff] (%p1165_p12), %v627_v62 }
 0x1d5   : > { %v633_v1 = vld [vmem:[%s1216_s28 + $0x78] sm:$0xff] }
 0x1d6   : > { %v631_v0 = vld [vmem:[%s1216_s28 + $0x70] sm:$0xff]  ;;  %634 = vst [vmem:[%s545_s3 + $0xf0] sm:$0xff] %v633_v1 }
 0x1d7   : > { %632 = vst [vmem:[%s545_s3 + $0xe0] sm:$0xff] %v631_v0 }
 0x1d8 PF: > { %s12_s21 = sadd.s32 1, %s1047_s21   ;;  %s1318_s5 = sld [smem:[#allocation6_spill]] }
 0x1d9   : > { %p1259_p4 = scmp.ge.s32.totalorder %s12_s21, 10   ;;  %s1319_s27 = sld [smem:[#allocation7_spill]] }
 0x1da   : > { %s1320_s9 = smov %s1003_s10  ;;  %s1321_s10 = smov %s1176_s15 }
 0x1db   : > { %s1322_s11 = smov %s1011_s12  ;;  %s1323_s12 = smov %s1173_s2 }
 0x1dc   : > { %s1324_s13 = smov %s1019_s14  ;;  %s1325_s14 = smov %s1170_s23 }
 0x1dd   : > { %s1326_s15 = smov %s1035_s18  ;;  %s1327_s16 = smov %s1039_s19 }
 0x1de   : > { %s1328_s17 = smov %s1043_s20  ;;  %s1329_s18 = smov %s1318_s5 }
 0x1df   : > { %s1330_s19 = smov %s1319_s27  ;;  %s1331_s20 = smov %s1341_s25 }
 0x1e0   :  { %11 = sbr.rel (!%p1259_p4) target bundleno = 9 (0x9), region = 185 }

</bundles_post_ra>
